<compile_context>
chip_gen: v5e
topology: v5e:2x2
jax: 0.10.0
libtpu: 0.0.40
codegen_flags: <defaults>
</compile_context>

<pallas_src>
import jax
import jax.numpy as jnp
from jax import lax
from jax.experimental import pallas as pl
from jax.experimental.pallas import tpu as pltpu

LANES = 128
ACC_ROWS_MAX = 1024                    # <= 512 KiB f32 accumulator scratch
TARGET_BLOCK_BYTES = 2 * 1024 * 1024   # ~2 MiB per input per grid step


def _round_up(x, m):
    return ((x + m - 1) // m) * m


def _make_kernel(block_rows, acc_rows, chunks, bpp, nblocks, rows,
                 ragged, guard_empty):
    """Build the kernel with all tiling parameters baked in as constants."""

    def kernel(t_ref, o_ref, out_ref, acc_ref):
        p = pl.program_id(0)           # "parallel" partition (megacore)
        i = pl.program_id(1)           # "arbitrary" reduction step

        @pl.when(i == 0)
        def _():
            acc_ref[...] = jnp.zeros_like(acc_ref)

        gb = p * bpp + i               # global row-block index

        def accumulate():
            if ragged:
                # Hoisted once per step; only needed when the last row-block
                # extends past the array (boundary DMA leaves garbage rows).
                rid0 = lax.broadcasted_iota(jnp.int32, (acc_rows, LANES), 0)
                blk_row0 = gb * block_rows
            # Static, fully-unrolled sub-chunk loop: aligned static slices,
            # keeps the working set at (acc_rows, 128) per chunk.
            for c in range(chunks):
                start = c * acc_rows
                t = t_ref[pl.ds(start, acc_rows), :].astype(jnp.float32)
                o = o_ref[pl.ds(start, acc_rows), :].astype(jnp.float32)
                d = t - o
                sq = d * d
                if ragged:
                    rid = rid0 + (blk_row0 + start)
                    sq = jnp.where(rid < rows, sq, 0.0)
                acc_ref[...] += sq

        if guard_empty:
            # Only the trailing block(s) of the last partition can be empty.
            @pl.when(gb < nblocks)
            def _():
                accumulate()
        else:
            accumulate()

        @pl.when(i == bpp - 1)
        def _():
            # Reduce the accumulator to one lane-dense (8,128) partial tile.
            out_ref[0] = acc_ref[...].reshape(acc_rows // 8, 8, LANES).sum(axis=0)

    return kernel


def l2_loss(target, output):
    """Pallas implementation of L2Loss.forward: sum((target - output) ** 2)."""
    target = lax.stop_gradient(target)            # target.detach()
    assert target.shape == output.shape
    n = target.size
    if n == 0:
        return jnp.float32(0.0)

    t = target.reshape(-1)
    o = output.reshape(-1)

    itemsize = max(jnp.dtype(target.dtype).itemsize,
                   jnp.dtype(output.dtype).itemsize)
    sub_mult = max(8, 32 // itemsize)             # 8 f32 / 16 bf16 / 32 int8

    rows = pl.cdiv(n, LANES)
    padded = rows * LANES
    if padded != n:
        # Only when N is not a multiple of 128 (<=127 zeros). Zero padding in
        # BOTH inputs => zero diff => contributes exactly 0 to the sum.
        t = jnp.pad(t, (0, padded - n))
        o = jnp.pad(o, (0, padded - n))
    t2d = t.reshape(rows, LANES)
    o2d = o.reshape(rows, LANES)

    # Block sizing: ~TARGET_BLOCK_BYTES per input per step, clamped for small
    # inputs, aligned to the dtype's sublane packing tile.
    block_rows = TARGET_BLOCK_BYTES // (LANES * itemsize)
    block_rows = min(block_rows, _round_up(rows, sub_mult))
    block_rows = _round_up(block_rows, sub_mult)

    if block_rows > ACC_ROWS_MAX:
        acc_rows = ACC_ROWS_MAX
        block_rows = (block_rows // acc_rows) * acc_rows   # keep divisible
    else:
        acc_rows = block_rows
    chunks = block_rows // acc_rows

    nblocks = pl.cdiv(rows, block_rows)
    num_parts = 2 if nblocks >= 2 else 1          # engage both v7x TCs
    bpp = pl.cdiv(nblocks, num_parts)             # blocks per partition
    guard_empty = (num_parts * bpp) != nblocks    # last partition may be short
    ragged = (nblocks * block_rows) != rows       # last block partially OOB

    if guard_empty:
        def in_map(p, i):
            return (jnp.minimum(p * bpp + i, nblocks - 1), 0)
    else:
        def in_map(p, i):
            return (p * bpp + i, 0)

    kernel = _make_kernel(block_rows, acc_rows, chunks, bpp, nblocks, rows,
                          ragged, guard_empty)

    partials = pl.pallas_call(
        kernel,
        out_shape=jax.ShapeDtypeStruct((num_parts, 8, LANES), jnp.float32),
        grid_spec=pltpu.PrefetchScalarGridSpec(
            num_scalar_prefetch=0,
            grid=(num_parts, bpp),
            in_specs=[pl.BlockSpec((block_rows, LANES), in_map),
                      pl.BlockSpec((block_rows, LANES), in_map)],
            out_specs=pl.BlockSpec((1, 8, LANES), lambda p, i: (p, 0, 0)),
            scratch_shapes=[pltpu.VMEM((acc_rows, LANES), jnp.float32)],
        ),
        compiler_params=pltpu.CompilerParams(
            dimension_semantics=("parallel", "arbitrary")),
    )(t2d, o2d)

    # Tiny final reduction over (num_parts, 8, 128) partials.
    return jnp.sum(partials)


def l2_loss_ref(target, output):
    """Pure-JAX reference mirroring nn.MSELoss(reduction='sum')."""
    d = target.astype(jnp.float32) - output.astype(jnp.float32)
    return jnp.sum(d * d)


if __name__ == "__main__":
    key = jax.random.PRNGKey(0)
    k1, k2 = jax.random.split(key)

    # Small shape consistent with the module usage.
    B, C, H, W = 2, 4, 16, 16
    target = jax.random.normal(k1, (B, C, H, W), dtype=jnp.float32)
    output = jax.random.normal(k2, (B, C, H, W), dtype=jnp.float32)

    out = jax.block_until_ready(jax.jit(l2_loss)(target, output))
    ref = l2_loss_ref(target, output)
    assert jnp.allclose(out, ref, rtol=1e-4, atol=1e-4), (out, ref)

    # Element count not a multiple of 128: exercises the pad-to-lane +
    # in-kernel ragged-row masking path.
    t2 = jax.random.normal(k1, (3, 5, 7, 11), dtype=jnp.float32)
    o2 = jax.random.normal(k2, (3, 5, 7, 11), dtype=jnp.float32)
    out2 = jax.block_until_ready(jax.jit(l2_loss)(t2, o2))
    ref2 = l2_loss_ref(t2, o2)
    assert jnp.allclose(out2, ref2, rtol=1e-4, atol=1e-4), (out2, ref2)

    # Larger input: multiple row-blocks, both grid partitions, chunked
    # accumulator, ragged final block (no full-array padding copy).
    t3 = jax.random.normal(k1, (2, 3, 512, 513), dtype=jnp.float32)
    o3 = jax.random.normal(k2, (2, 3, 512, 513), dtype=jnp.float32)
    out3 = jax.block_until_ready(jax.jit(l2_loss)(t3, o3))
    ref3 = l2_loss_ref(t3, o3)
    assert jnp.allclose(out3, ref3, rtol=1e-4, atol=1e-4), (out3, ref3)

    # bf16 inputs: exercises the 16-sublane packing-aware block sizing.
    t4 = t3.astype(jnp.bfloat16)
    o4 = o3.astype(jnp.bfloat16)
    out4 = jax.block_until_ready(jax.jit(l2_loss)(t4, o4))
    ref4 = l2_loss_ref(t4, o4)
    assert jnp.allclose(out4, ref4, rtol=1e-3, atol=1e-3), (out4, ref4)

    print("KERNEL_OK")
</pallas_src>

<mosaic_0001>
module attributes {stable_mosaic.version = 11 : i64} {
  func.func @kernel(%arg0: i32, %arg1: i32, %arg2: memref<16x128xf32, #tpu.memory_space<vmem>>, %arg3: memref<16x128xf32, #tpu.memory_space<vmem>>, %arg4: memref<1x8x128xf32, #tpu.memory_space<vmem>>, %arg5: memref<16x128xf32, #tpu.memory_space<vmem>>) attributes {dimension_semantics = [#tpu.dimension_semantics<parallel>, #tpu.dimension_semantics<arbitrary>], iteration_bounds = array<i64: 1, 1>, scalar_prefetch = 0 : i64, scratch_operands = 1 : i64, tpu.core_type = #tpu.core_type<tc>, window_params = [{transform_indices = @transform_0, window_bounds = array<i64: 16, 128>}, {transform_indices = @transform_1, window_bounds = array<i64: 16, 128>}, {transform_indices = @transform_2, window_bounds = array<i64: 1, 8, 128>}]} {
    %c0_i32 = arith.constant 0 : i32
    %0 = arith.cmpi eq, %arg1, %c0_i32 : i32
    %1 = arith.extui %0 : i1 to i32
    %c0_i32_0 = arith.constant 0 : i32
    %2 = arith.cmpi ne, %1, %c0_i32_0 : i32
    scf.if %2 {
      %cst = arith.constant 0.000000e+00 : f32
      %13 = vector.broadcast %cst : f32 to vector<16x128xf32>
      %c0_10 = arith.constant 0 : index
      %c0_11 = arith.constant 0 : index
      %14 = vector.load %arg5[%c0_10, %c0_11] : memref<16x128xf32, #tpu.memory_space<vmem>>, vector<16x128xf32>
      tpu.vector_store %arg5[%c0_10, %c0_11], %13 {strides = array<i32>} : memref<16x128xf32, #tpu.memory_space<vmem>>, vector<16x128xf32>,
    } else {
    }
    %c0 = arith.constant 0 : index
    %c0_1 = arith.constant 0 : index
    %3 = vector.load %arg2[%c0, %c0_1] : memref<16x128xf32, #tpu.memory_space<vmem>>, vector<16x128xf32>
    %c0_2 = arith.constant 0 : index
    %c0_3 = arith.constant 0 : index
    %4 = vector.load %arg3[%c0_2, %c0_3] : memref<16x128xf32, #tpu.memory_space<vmem>>, vector<16x128xf32>
    %5 = arith.subf %3, %4 : vector<16x128xf32>
    %6 = arith.mulf %5, %5 : vector<16x128xf32>
    %c0_4 = arith.constant 0 : index
    %c0_5 = arith.constant 0 : index
    %7 = vector.load %arg5[%c0_4, %c0_5] : memref<16x128xf32, #tpu.memory_space<vmem>>, vector<16x128xf32>
    %8 = arith.addf %7, %6 : vector<16x128xf32>
    %c0_6 = arith.constant 0 : index
    %c0_7 = arith.constant 0 : index
    %9 = vector.load %arg5[%c0_6, %c0_7] : memref<16x128xf32, #tpu.memory_space<vmem>>, vector<16x128xf32>
    tpu.vector_store %arg5[%c0_6, %c0_7], %8 {strides = array<i32>} : memref<16x128xf32, #tpu.memory_space<vmem>>, vector<16x128xf32>,
    %c0_i32_8 = arith.constant 0 : i32
    %10 = arith.cmpi eq, %arg1, %c0_i32_8 : i32
    %11 = arith.extui %10 : i1 to i32
    %c0_i32_9 = arith.constant 0 : i32
    %12 = arith.cmpi ne, %11, %c0_i32_9 : i32
    scf.if %12 {
      %c0_10 = arith.constant 0 : index
      %c0_11 = arith.constant 0 : index
      %13 = vector.load %arg5[%c0_10, %c0_11] : memref<16x128xf32, #tpu.memory_space<vmem>>, vector<16x128xf32>
      %14 = vector.shape_cast %13 : vector<16x128xf32> to vector<2x8x128xf32>
      %cst = arith.constant dense<0.000000e+00> : vector<8x128xf32>
      %15 = vector.multi_reduction <add>, %14, %cst [0] : vector<2x8x128xf32> to vector<8x128xf32>
      %c0_12 = arith.constant 0 : index
      %c0_13 = arith.constant 0 : index
      %c0_14 = arith.constant 0 : index
      %16 = vector.load %arg4[%c0_12, %c0_13, %c0_14] : memref<1x8x128xf32, #tpu.memory_space<vmem>>, vector<1x8x128xf32>
      %17 = vector.shape_cast %16 : vector<1x8x128xf32> to vector<8x128xf32>
      %18 = vector.shape_cast %15 : vector<8x128xf32> to vector<1x8x128xf32>
      tpu.vector_store %arg4[%c0_12, %c0_13, %c0_14], %18 {strides = array<i32>} : memref<1x8x128xf32, #tpu.memory_space<vmem>>, vector<1x8x128xf32>,
    } else {
    }
    return
  }
  func.func @transform_0(%arg0: i32, %arg1: i32) -> (i32, i32) {
    %c1_i32 = arith.constant 1 : i32
    %0 = arith.muli %arg0, %c1_i32 : i32
    %1 = arith.addi %0, %arg1 : i32
    %c0_i32 = arith.constant 0 : i32
    %c0_i32_0 = arith.constant 0 : i32
    return %1, %c0_i32 : i32, i32
  }
  func.func @transform_1(%arg0: i32, %arg1: i32) -> (i32, i32) {
    %c1_i32 = arith.constant 1 : i32
    %0 = arith.muli %arg0, %c1_i32 : i32
    %1 = arith.addi %0, %arg1 : i32
    %c0_i32 = arith.constant 0 : i32
    %c0_i32_0 = arith.constant 0 : i32
    return %1, %c0_i32 : i32, i32
  }
  func.func @transform_2(%arg0: i32, %arg1: i32) -> (i32, i32, i32) {
    %c0_i32 = arith.constant 0 : i32
    %c0_i32_0 = arith.constant 0 : i32
    %c0_i32_1 = arith.constant 0 : i32
    return %arg0, %c0_i32, %c0_i32_0 : i32, i32, i32
  }
}

</mosaic_0001>

<bundles_post_ra>
// kernel: l2_loss.1
= control target key start
LH: loop header
LB: loop body
LE: loop exit
PB: predicated region body
PF: predicated region fallthrough
CT: control target
= control target key end

     0   :  { %s128_s0 = inlined_call_operand.vmem [shape: f32[16,128], index: 0, kind: input, shape index: {}]   ;;  %s129_s1 = inlined_call_operand.vmem [shape: f32[16,128], index: 1, kind: input, shape index: {}]   ;;  %s130_s2 = inlined_call_operand.vmem [shape: f32[1,8,128], index: 2, kind: output, shape index: {}]  }
   0x1   :  { %v61_v0 = vld [vmem:[%s128_s0] sm:$0xff]  ;;  %v62_v1 = vld [vmem:[%s128_s0 + $0x8] sm:$0xff] }
   0x2   :  { %v63_v2 = vld [vmem:[%s129_s1] sm:$0xff]  ;;  %v64_v3 = vld [vmem:[%s129_s1 + $0x8] sm:$0xff] }
   0x3   :  { %v65_v4 = vsub.f32 %v61_v0, %v63_v2  ;;  %v66_v5 = vsub.f32 %v62_v1, %v64_v3 }
   0x5   :  { %v67_v6 = vmul.f32 %v65_v4, %v65_v4  ;;  %v68_v7 = vmul.f32 %v66_v5, %v66_v5 }
   0x7   :  { %v80_v8 = vadd.f32 %v68_v7, %v67_v6 }
   0x9   :  { %81 = vst [vmem:[%s130_s2] sm:$0xff] %v80_v8 }

</bundles_post_ra>
